<compile_context>
chip_gen: v7x
topology: tpu7x:2x2x1
jax: 0.10.0
libtpu: 0.0.40
codegen_flags: <defaults>
</compile_context>

<pallas_src>
import functools
import math

import jax
import jax.numpy as jnp
from jax import lax
from jax.experimental import pallas as pl
from jax.experimental.pallas import tpu as pltpu

EPS = 1e-5  # torch.nn.GroupNorm default


def _round_up(x, m):
    return ((x + m - 1) // m) * m


def _segment_sum_bcast(col, cg):
    """Sum consecutive `cg` rows of a (BR, 1) f32 column and broadcast the sum
    back to every row of its segment (BR % cg == 0, segments aligned).

    Pure VPU/XLU work (iota / roll / select / add): no MXU matvec on the
    serial stats path, no (BR, BR) operator living in VMEM.
    """
    if cg == 1:
        return col
    pos = lax.broadcasted_iota(jnp.int32, col.shape, 0) % cg  # pos within group
    if cg & (cg - 1) == 0:
        # Power-of-two segments: hypercube butterfly, log2(cg) steps.
        acc = col
        step = 1
        while step < cg:
            down = jnp.roll(acc, -step, axis=0)   # value of row (r + step)
            up = jnp.roll(acc, step, axis=0)      # value of row (r - step)
            acc = acc + jnp.where((pos & step) == 0, down, up)
            step *= 2
        return acc
    # General cg: O(cg) shift / mask / accumulate.
    acc = col
    for s in range(1, cg):
        down = jnp.roll(col, -s, axis=0)
        up = jnp.roll(col, s, axis=0)
        acc = acc + jnp.where(pos + s < cg, down, 0.0) \
                  + jnp.where(pos >= s, up, 0.0)
    return acc


def _groupnorm_kernel(x_ref, gamma_ref, beta_ref, o_ref, *, cg, inv_count):
    # x_ref:     (BR, HW)  one channel per row; every `cg` consecutive rows
    #                      form one (batch, group) normalization group.
    # gamma_ref: (BR, 1)   per-row (per-channel) scale, f32
    # beta_ref:  (BR, 1)   per-row shift, f32
    x_in = x_ref[...]
    # bf16 inputs keep the heavy elementwise passes in bf16 (v6e/v7x VALUs are
    # bf16-native); everything else runs in f32 (v5e has no bf16 VALU and f32
    # inputs must stay exact).  Statistics always accumulate in f32.
    cdt = jnp.bfloat16 if x_in.dtype == jnp.bfloat16 else jnp.float32
    x = x_in.astype(cdt)

    # Pass 1: group mean.  Lane reduce per row (f32 accumulation), then
    # combine the `cg` rows of each group with the roll-based segment reduce.
    row_sum = jnp.sum(x, axis=-1, keepdims=True, dtype=jnp.float32)   # (BR, 1)
    mean = _segment_sum_bcast(row_sum, cg) * inv_count                # (BR, 1)

    # Pass 2: biased variance about the mean (two-pass, numerically stable).
    xm = x - mean.astype(cdt)
    row_sq = jnp.sum(xm * xm, axis=-1, keepdims=True, dtype=jnp.float32)
    var = _segment_sum_bcast(row_sq, cg) * inv_count
    rstd = lax.rsqrt(var + EPS)

    # Fold normalization + affine into one FMA over the big tile:
    #   y = x * scale + shift,  scale = rstd*gamma,  shift = beta - mean*scale.
    scale = rstd * gamma_ref[...]                                     # (BR, 1)
    shift = beta_ref[...] - mean * scale                              # (BR, 1)
    y = x * scale.astype(cdt) + shift.astype(cdt)
    o_ref[...] = y.astype(o_ref.dtype)


def _choose_row_block(n_rows, cg, hw, *, budget_bytes=3 << 20, max_rows=2048):
    """Pick the per-step row-block size BR.

    BR is a multiple of lcm(cg, 8): whole groups per block plus the (8, 128)
    sublane rule.  It targets ~budget_bytes of f32-equivalent tile data per
    step (big DMAs amortize the ~0.35 us fixed per-step cost, which matters
    most on v7x's fast HBM) while keeping the double-buffered working set well
    inside VMEM.  The grid uses cdiv so BR need not divide n_rows; an even
    number of grid steps is preferred so v7x megacore shards the axis evenly.
    """
    unit = (cg * 8) // math.gcd(cg, 8)
    budget_rows = max(1, budget_bytes // (hw * 4))
    cap = min(max_rows, budget_rows)
    br = max(unit, (cap // unit) * unit)
    br = min(br, _round_up(n_rows, unit))
    # TODO(synk): for huge cg*hw (a single-group block far above the budget)
    # split HW over an extra 'arbitrary' grid axis and accumulate sum /
    # sum-of-squares in VMEM scratch instead of relying on a raised limit.
    steps = pl.cdiv(n_rows, br)
    if steps > 1 and steps % 2 == 1:
        alt = _round_up(pl.cdiv(n_rows, steps + 1), unit)
        if alt >= unit and pl.cdiv(n_rows, alt) % 2 == 0 and 2 * alt >= br:
            br = alt
    return br


def _vmem_limit_bytes(br, hw, io_itemsize, compute_itemsize):
    """Scoped-VMEM limit derived from the actual working set.

    Double-buffered in/out tiles + compute-dtype temporaries + the f32 upcast
    feeding the lane reductions + lane-padded (BR, 1) statistic columns.
    Normal configurations land well under 48 MiB (v7x-safe, 64 MiB physical);
    the upper clamp is only reachable in the oversized-single-group TODO case.
    """
    tile = br * hw
    est = 2 * tile * io_itemsize          # input tile, double-buffered
    est += 2 * tile * io_itemsize         # output tile, double-buffered
    est += 2 * tile * compute_itemsize    # x (compute dtype) + centered copy
    est += tile * 4                       # f32 upcast inside the reductions
    est += 8 * br * 128 * 4               # lane-padded (BR, 1) f32 columns
    est += 4 * br * 4                     # gamma/beta blocks, double-buffered
    est += 2 << 20                        # slack
    return int(min(max(32 << 20, est), 100 << 20))


def stable_norm(x, gamma, beta, num_groups):
    """GroupNorm(num_groups, C) forward.  x: (N, C, H, W); gamma/beta: (C,)."""
    N, C, H, W = x.shape
    G = num_groups
    assert C % G == 0, "num_channels must be divisible by num_groups"
    Cg = C // G
    HW = H * W
    n_rows = N * C

    BR = _choose_row_block(n_rows, Cg, HW)
    num_blocks = pl.cdiv(n_rows, BR)

    io_itemsize = jnp.dtype(x.dtype).itemsize
    compute_itemsize = 2 if x.dtype == jnp.bfloat16 else 4
    vmem_limit = _vmem_limit_bytes(BR, HW, io_itemsize, compute_itemsize)

    # Row-packed views (free reshapes: the underlying layout is contiguous).
    # TODO(synk): when HW % 128 != 0 (7x7 / 14x14 maps) switch to the
    # group-per-row layout (N*G, Cg*HW) so output stores stay lane-dense.
    x2 = x.reshape(n_rows, HW)
    gamma_rows = jnp.tile(gamma.astype(jnp.float32), N).reshape(n_rows, 1)
    beta_rows = jnp.tile(beta.astype(jnp.float32), N).reshape(n_rows, 1)

    kernel = functools.partial(_groupnorm_kernel, cg=Cg,
                               inv_count=1.0 / float(Cg * HW))

    out = pl.pallas_call(
        kernel,
        out_shape=jax.ShapeDtypeStruct((n_rows, HW), x.dtype),
        grid_spec=pltpu.PrefetchScalarGridSpec(
            num_scalar_prefetch=0,
            grid=(num_blocks,),
            in_specs=[
                pl.BlockSpec((BR, HW), lambda i: (i, 0)),
                pl.BlockSpec((BR, 1), lambda i: (i, 0)),
                pl.BlockSpec((BR, 1), lambda i: (i, 0)),
            ],
            out_specs=pl.BlockSpec((BR, HW), lambda i: (i, 0)),
        ),
        compiler_params=pltpu.CompilerParams(
            # Independent row blocks: megacore (v7x) shards this axis.
            dimension_semantics=("parallel",),
            vmem_limit_bytes=vmem_limit,
        ),
    )(x2, gamma_rows, beta_rows)

    return out.reshape(N, C, H, W)


def _reference_groupnorm(x, gamma, beta, num_groups):
    N, C, H, W = x.shape
    G = num_groups
    xr = x.reshape(N, G, -1).astype(jnp.float32)
    mean = xr.mean(axis=-1, keepdims=True)
    var = ((xr - mean) ** 2).mean(axis=-1, keepdims=True)
    y = ((xr - mean) * lax.rsqrt(var + EPS)).reshape(N, C, H, W)
    return y * gamma[None, :, None, None] + beta[None, :, None, None]


if __name__ == "__main__":
    # StableNorm(num_groups=2, num_channels=4)
    num_groups = 2
    N, C, H, W = 2, 4, 16, 16

    key = jax.random.PRNGKey(0)
    x = jax.random.normal(key, (N, C, H, W), dtype=jnp.float32)

    # Deterministic non-trivial affine parameters (stand-ins for the learned
    # nn.GroupNorm weight / bias, each of shape (C,)).
    gamma = 1.0 + 0.1 * jnp.arange(C, dtype=jnp.float32)
    beta = 0.05 * jnp.arange(C, dtype=jnp.float32)

    out = jax.block_until_ready(stable_norm(x, gamma, beta, num_groups))

    ref = _reference_groupnorm(x, gamma, beta, num_groups)
    assert out.shape == (N, C, H, W)
    assert jnp.max(jnp.abs(out - ref)) < 1e-4

    print("KERNEL_OK")
</pallas_src>

<mosaic_0001>
module attributes {stable_mosaic.version = 11 : i64} {
  func.func @_groupnorm_kernel(%arg0: i32, %arg1: memref<8x256xf32, #tpu.memory_space<vmem>>, %arg2: memref<8x1xf32, #tpu.memory_space<vmem>>, %arg3: memref<8x1xf32, #tpu.memory_space<vmem>>, %arg4: memref<8x256xf32, #tpu.memory_space<vmem>>) attributes {dimension_semantics = [#tpu.dimension_semantics<parallel>], iteration_bounds = array<i64: 1>, scalar_prefetch = 0 : i64, scratch_operands = 0 : i64, tpu.core_type = #tpu.core_type<tc>, window_params = [{transform_indices = @transform_0, window_bounds = array<i64: 8, 256>}, {transform_indices = @transform_1, window_bounds = array<i64: 8, 1>}, {transform_indices = @transform_2, window_bounds = array<i64: 8, 1>}, {transform_indices = @transform_3, window_bounds = array<i64: 8, 256>}]} {
    %c0 = arith.constant 0 : index
    %c0_0 = arith.constant 0 : index
    %0 = vector.load %arg1[%c0, %c0_0] : memref<8x256xf32, #tpu.memory_space<vmem>>, vector<8x256xf32>
    %cst = arith.constant dense<0.000000e+00> : vector<8xf32>
    %1 = vector.multi_reduction <add>, %0, %cst [1] : vector<8x256xf32> to vector<8xf32>
    %2 = vector.shape_cast %1 : vector<8xf32> to vector<8x1xf32>
    %3 = tpu.iota {dimensions = array<i32: 0>} : vector<8x1xi32>
    %c2_i32 = arith.constant 2 : i32
    %c0_i32 = arith.constant 0 : i32
    %4 = arith.cmpi eq, %c2_i32, %c0_i32 : i32
    %c1_i32 = arith.constant 1 : i32
    %5 = arith.select %4, %c1_i32, %c2_i32 : i32
    %6 = vector.broadcast %5 : i32 to vector<8x1xi32>
    %7 = arith.remsi %3, %6 : vector<8x1xi32>
    %c0_i32_1 = arith.constant 0 : i32
    %8 = vector.broadcast %c0_i32_1 : i32 to vector<8x1xi32>
    %9 = arith.cmpi ne, %7, %8 : vector<8x1xi32>
    %c0_i32_2 = arith.constant 0 : i32
    %10 = vector.broadcast %c0_i32_2 : i32 to vector<8x1xi32>
    %11 = arith.cmpi slt, %7, %10 : vector<8x1xi32>
    %c0_i32_3 = arith.constant 0 : i32
    %12 = arith.cmpi slt, %5, %c0_i32_3 : i32
    %13 = vector.broadcast %12 : i1 to vector<8x1xi1>
    %14 = vector.broadcast %13 : vector<8x1xi1> to vector<8x1xi1>
    %15 = arith.xori %11, %14 : vector<8x1xi1>
    %16 = arith.andi %15, %9 : vector<8x1xi1>
    %17 = vector.broadcast %5 : i32 to vector<8x1xi32>
    %18 = arith.addi %7, %17 : vector<8x1xi32>
    %19 = arith.select %16, %18, %7 : vector<8x1xi1>, vector<8x1xi32>
    %20 = vector.extract_strided_slice %2 {offsets = [1, 0], sizes = [7, 1], strides = [1, 1]} : vector<8x1xf32> to vector<7x1xf32>
    %21 = vector.extract_strided_slice %2 {offsets = [0, 0], sizes = [1, 1], strides = [1, 1]} : vector<8x1xf32> to vector<1x1xf32>
    %22 = tpu.concatenate %20, %21 in 0 : vector<7x1xf32>, vector<1x1xf32> -> vector<8x1xf32>
    %23 = vector.extract_strided_slice %2 {offsets = [7, 0], sizes = [1, 1], strides = [1, 1]} : vector<8x1xf32> to vector<1x1xf32>
    %24 = vector.extract_strided_slice %2 {offsets = [0, 0], sizes = [7, 1], strides = [1, 1]} : vector<8x1xf32> to vector<7x1xf32>
    %25 = tpu.concatenate %23, %24 in 0 : vector<1x1xf32>, vector<7x1xf32> -> vector<8x1xf32>
    %c1_i32_4 = arith.constant 1 : i32
    %26 = vector.broadcast %c1_i32_4 : i32 to vector<8x1xi32>
    %27 = arith.andi %19, %26 : vector<8x1xi32>
    %c0_i32_5 = arith.constant 0 : i32
    %28 = vector.broadcast %c0_i32_5 : i32 to vector<8x1xi32>
    %29 = arith.cmpi eq, %27, %28 : vector<8x1xi32>
    %30 = arith.select %29, %22, %25 : vector<8x1xi1>, vector<8x1xf32>
    %31 = arith.addf %2, %30 : vector<8x1xf32>
    %cst_6 = arith.constant 0.001953125 : f32
    %32 = vector.broadcast %cst_6 : f32 to vector<8x1xf32>
    %33 = arith.mulf %31, %32 : vector<8x1xf32>
    %34 = vector.broadcast %33 : vector<8x1xf32> to vector<8x256xf32>
    %35 = arith.subf %0, %34 : vector<8x256xf32>
    %36 = arith.mulf %35, %35 : vector<8x256xf32>
    %cst_7 = arith.constant dense<0.000000e+00> : vector<8xf32>
    %37 = vector.multi_reduction <add>, %36, %cst_7 [1] : vector<8x256xf32> to vector<8xf32>
    %38 = vector.shape_cast %37 : vector<8xf32> to vector<8x1xf32>
    %39 = tpu.iota {dimensions = array<i32: 0>} : vector<8x1xi32>
    %c2_i32_8 = arith.constant 2 : i32
    %c0_i32_9 = arith.constant 0 : i32
    %40 = arith.cmpi eq, %c2_i32_8, %c0_i32_9 : i32
    %c1_i32_10 = arith.constant 1 : i32
    %41 = arith.select %40, %c1_i32_10, %c2_i32_8 : i32
    %42 = vector.broadcast %41 : i32 to vector<8x1xi32>
    %43 = arith.remsi %39, %42 : vector<8x1xi32>
    %c0_i32_11 = arith.constant 0 : i32
    %44 = vector.broadcast %c0_i32_11 : i32 to vector<8x1xi32>
    %45 = arith.cmpi ne, %43, %44 : vector<8x1xi32>
    %c0_i32_12 = arith.constant 0 : i32
    %46 = vector.broadcast %c0_i32_12 : i32 to vector<8x1xi32>
    %47 = arith.cmpi slt, %43, %46 : vector<8x1xi32>
    %c0_i32_13 = arith.constant 0 : i32
    %48 = arith.cmpi slt, %41, %c0_i32_13 : i32
    %49 = vector.broadcast %48 : i1 to vector<8x1xi1>
    %50 = vector.broadcast %49 : vector<8x1xi1> to vector<8x1xi1>
    %51 = arith.xori %47, %50 : vector<8x1xi1>
    %52 = arith.andi %51, %45 : vector<8x1xi1>
    %53 = vector.broadcast %41 : i32 to vector<8x1xi32>
    %54 = arith.addi %43, %53 : vector<8x1xi32>
    %55 = arith.select %52, %54, %43 : vector<8x1xi1>, vector<8x1xi32>
    %56 = vector.extract_strided_slice %38 {offsets = [1, 0], sizes = [7, 1], strides = [1, 1]} : vector<8x1xf32> to vector<7x1xf32>
    %57 = vector.extract_strided_slice %38 {offsets = [0, 0], sizes = [1, 1], strides = [1, 1]} : vector<8x1xf32> to vector<1x1xf32>
    %58 = tpu.concatenate %56, %57 in 0 : vector<7x1xf32>, vector<1x1xf32> -> vector<8x1xf32>
    %59 = vector.extract_strided_slice %38 {offsets = [7, 0], sizes = [1, 1], strides = [1, 1]} : vector<8x1xf32> to vector<1x1xf32>
    %60 = vector.extract_strided_slice %38 {offsets = [0, 0], sizes = [7, 1], strides = [1, 1]} : vector<8x1xf32> to vector<7x1xf32>
    %61 = tpu.concatenate %59, %60 in 0 : vector<1x1xf32>, vector<7x1xf32> -> vector<8x1xf32>
    %c1_i32_14 = arith.constant 1 : i32
    %62 = vector.broadcast %c1_i32_14 : i32 to vector<8x1xi32>
    %63 = arith.andi %55, %62 : vector<8x1xi32>
    %c0_i32_15 = arith.constant 0 : i32
    %64 = vector.broadcast %c0_i32_15 : i32 to vector<8x1xi32>
    %65 = arith.cmpi eq, %63, %64 : vector<8x1xi32>
    %66 = arith.select %65, %58, %61 : vector<8x1xi1>, vector<8x1xf32>
    %67 = arith.addf %38, %66 : vector<8x1xf32>
    %cst_16 = arith.constant 0.001953125 : f32
    %68 = vector.broadcast %cst_16 : f32 to vector<8x1xf32>
    %69 = arith.mulf %67, %68 : vector<8x1xf32>
    %cst_17 = arith.constant 9.99999974E-6 : f32
    %70 = vector.broadcast %cst_17 : f32 to vector<8x1xf32>
    %71 = arith.addf %69, %70 : vector<8x1xf32>
    %72 = math.rsqrt %71 : vector<8x1xf32>
    %c0_18 = arith.constant 0 : index
    %c0_19 = arith.constant 0 : index
    %73 = vector.load %arg2[%c0_18, %c0_19] : memref<8x1xf32, #tpu.memory_space<vmem>>, vector<8x1xf32>
    %74 = arith.mulf %72, %73 : vector<8x1xf32>
    %c0_20 = arith.constant 0 : index
    %c0_21 = arith.constant 0 : index
    %75 = vector.load %arg3[%c0_20, %c0_21] : memref<8x1xf32, #tpu.memory_space<vmem>>, vector<8x1xf32>
    %76 = arith.mulf %33, %74 : vector<8x1xf32>
    %77 = arith.subf %75, %76 : vector<8x1xf32>
    %78 = vector.broadcast %74 : vector<8x1xf32> to vector<8x256xf32>
    %79 = arith.mulf %0, %78 : vector<8x256xf32>
    %80 = vector.broadcast %77 : vector<8x1xf32> to vector<8x256xf32>
    %81 = arith.addf %79, %80 : vector<8x256xf32>
    %c0_22 = arith.constant 0 : index
    %c0_23 = arith.constant 0 : index
    %82 = vector.load %arg4[%c0_22, %c0_23] : memref<8x256xf32, #tpu.memory_space<vmem>>, vector<8x256xf32>
    tpu.vector_store %arg4[%c0_22, %c0_23], %81 {strides = array<i32>} : memref<8x256xf32, #tpu.memory_space<vmem>>, vector<8x256xf32>,
    return
  }
  func.func @transform_0(%arg0: i32) -> (i32, i32) {
    %c0_i32 = arith.constant 0 : i32
    %c0_i32_0 = arith.constant 0 : i32
    return %arg0, %c0_i32 : i32, i32
  }
  func.func @transform_1(%arg0: i32) -> (i32, i32) {
    %c0_i32 = arith.constant 0 : i32
    %c0_i32_0 = arith.constant 0 : i32
    return %arg0, %c0_i32 : i32, i32
  }
  func.func @transform_2(%arg0: i32) -> (i32, i32) {
    %c0_i32 = arith.constant 0 : i32
    %c0_i32_0 = arith.constant 0 : i32
    return %arg0, %c0_i32 : i32, i32
  }
  func.func @transform_3(%arg0: i32) -> (i32, i32) {
    %c0_i32 = arith.constant 0 : i32
    %c0_i32_0 = arith.constant 0 : i32
    return %arg0, %c0_i32 : i32, i32
  }
}

</mosaic_0001>

<bundles_post_ra>
// kernel: tpu_custom_call.1
= control target key start
LH: loop header
LB: loop body
LE: loop exit
PB: predicated region body
PF: predicated region fallthrough
CT: control target
= control target key end

     0   :  { %s191_s0 = inlined_call_operand.vmem [shape: f32[8,256], index: 0, kind: input, shape index: {}]   ;;  %s192_s1 = inlined_call_operand.vmem [shape: f32[8,1], index: 1, kind: input, shape index: {}]   ;;  %s193_s2 = inlined_call_operand.vmem [shape: f32[8,1], index: 2, kind: input, shape index: {}]   ;;  %s194_s3 = inlined_call_operand.hbm [shape: f32[8,256], index: 3, kind: output, shape index: {}]  }
   0x1   :  { %v15_v0 = vld [vmem:[%s191_s0] sm:$0xff]  ;;  %v16_v1 = vld [vmem:[%s191_s0 + $0x8] sm:$0xff] }
   0x2   :  { %8 = vsyncpa [#allocation3], 0  ;;  %v17_v2 = vadd.f32 %v16_v1, %v15_v0  ;;  %v137_v3 = vmov 0   ;;  %v20_v4 = vlaneseq  ;;  %v72_v27 = vld [vmem:[%s192_s1] sm:$0xff]  ;;  %s138_s19 = smov [#allocation2]  }
   0x3   :  { %109 = vset.pattern.permute.xlu0 %v137_v3  ;;  %110 = vset.pattern.permute.xlu1 %v137_v3  ;;  %v74_v30 = vld [vmem:[%s193_s2] sm:$0xff]  ;;  %s99_s20 = sshll.u32 %s138_s19, 4  ;;  %s100_s20 = int_to_ptr.vmem [resolvable:$true] %s99_s20 }
   0x4   :  { %18 = vadd.xlane.f32.xlu0 %v17_v2  ;;  %v21_v5 = vshrl.u32 %v20_v4, 7  ;;  %s113_s1 = scalar_lea.vmem %s100_s20, 256  ;;  %p118_p1 = scmp.lt.s32.totalorder %s100_s20, %s100_s20 }
   0x5   :  { %p114_p0 = scmp.ne.s32.totalorder %s100_s20, %s113_s1  ;;  %p119_p2 = scmp.lt.s32.totalorder %s113_s1, %s113_s1 }
   0x6   :  { %v26_v6 = vand.u32 1, %v21_v5 }
   0x7   :  { %p120_p3 = por %p119_p2, %p118_p1 }
   0x8   :  { %vm165_vm0 = vcmp.eq.s32.totalorder %v26_v6, 0 }
   0x9   :  { %p121_p4 = pnand %p120_p3, %p114_p0 }
  0x91   :  { %v19_v8 = vpop.xlane.xlu0 %18 }
  0x92   :  { %v35_v9 = vrot.slane %v19_v8, 1  ;;  %v39_v10 = vrot.slane %v19_v8, 7 }
  0x94   :  { %v45_v11 = vsel %vm165_vm0, %v35_v9, %v39_v10 }
  0x95   :  { %v46_v12 = vadd.f32 %v45_v11, %v19_v8 }
  0x97   :  { %v47_v13 = vmul.f32 0.001953125, %v46_v12 }
  0x99   :  { %50 = vperm.xlu0 %109, %v47_v13  }
 0x118   :  { %v51_v14 = vpop.permute.xlu0 %50 }
 0x119   :  { %v53_v15 = vsub.f32 %v15_v0, %v51_v14  ;;  %v54_v16 = vsub.f32 %v16_v1, %v51_v14 }
 0x11b   :  { %v55_v17 = vmul.f32 %v53_v15, %v53_v15  ;;  %v56_v18 = vmul.f32 %v54_v16, %v54_v16 }
 0x11d   :  { %v57_v19 = vadd.f32 %v56_v18, %v55_v17 }
 0x11f   :  { %58 = vadd.xlane.f32.xlu1 %v57_v19 }
 0x1ac   :  { %v59_v20 = vpop.xlane.xlu1 %58 }
 0x1ad   :  { %v61_v21 = vrot.slane %v59_v20, 1  ;;  %v64_v22 = vrot.slane %v59_v20, 7 }
 0x1af   :  { %v67_v23 = vsel %vm165_vm0, %v61_v21, %v64_v22 }
 0x1b0   :  { %v68_v24 = vadd.f32 %v67_v23, %v59_v20 }
 0x1b2   :  { %v69_v25 = vmul.f32 0.001953125, %v68_v24 }
 0x1b4   :  { %v70_v26 = vadd.f32 1e-05, %v69_v25 }
 0x1b6   :  { %111 = vrsqrt.f32 %v70_v26 }
 0x1c0   :  { %v112_v28 = vpop.eup %111 }
 0x1c1   :  { %v73_v29 = vmul.f32 %v112_v28, %v72_v27 }
 0x1c3   :  { %79 = vperm.xlu1 %110, %v73_v29   ;;  %v75_v31 = vmul.f32 %v73_v29, %v47_v13 }
 0x1c5   :  { %v76_v32 = vsub.f32 %v74_v30, %v75_v31 }
 0x1c7   :  { %86 = vperm.xlu1 %110, %v76_v32  }
 0x242   :  { %v80_v33 = vpop.permute.xlu1 %79 }
 0x243   :  { %v82_v34 = vmul.f32 %v80_v33, %v15_v0  ;;  %v83_v35 = vmul.f32 %v80_v33, %v16_v1 }
 0x246   :  { %v87_v36 = vpop.permute.xlu1 %86 }
 0x247   :  { %v89_v37 = vadd.f32 %v87_v36, %v82_v34  ;;  %v90_v38 = vadd.f32 %v87_v36, %v83_v35 }
 0x249   :  { %91 = vst [vmem:[#allocation2] sm:$0xff] %v89_v37  ;;  %92 = vst [vmem:[#allocation2 + $0x8] sm:$0xff] %v90_v38 }
 0x24a   :  { %124 = shalt.err (!%p121_p4)
}
 0x24b   :  { %s125_s22 = scalar_lea.hbm %s194_s3, 256 }
 0x24c   :  { %p126_p5 = scmp.ne.s32.totalorder %s194_s3, %s125_s22  ;;  %p129_p6 = scmp.lt.u32.totalorder %s125_s22, %s194_s3 }
 0x24e   :  { %p131_p7 = pnand %p129_p6, %p126_p5 }
 0x250   :  { %134 = shalt.err (!%p131_p7)
}
 0x251   :  { %102 = dma.vmem_to_hbm [thread:$0]  %s100_s20, 256, %s194_s3, [#allocation3]  }
 0x252   :  { %135 = dma.done.wait [#allocation3], 256  }
 0x253   :  { %136 = vsyncadd [#allocation3], 4294967040 }
 0x254   :  { %106 = vsyncpa [#allocation3], 1 }

</bundles_post_ra>
